<compile_context>
chip_gen: v7x
topology: tpu7x:2x2x1
jax: 0.10.0
libtpu: 0.0.40
codegen_flags: <defaults>
</compile_context>

<pallas_src>
import jax
import jax.numpy as jnp
from jax.experimental import pallas as pl
from jax.experimental.pallas import tpu as pltpu

# (fan_in, fan_out) per layer, PyTorch nn.Linear order.
_LAYER_DIMS = [(4, 10), (10, 20), (20, 20), (20, 10), (10, 1)]
# Row offset of each layer inside the packed weight/bias blocks (16-aligned so
# in-kernel static slices stay layout-friendly for bf16 sublane packing).
_ROW_OFF = [0, 16, 48, 80, 96]
_PACK_ROWS = 112            # >= 96 + 1, rounded up to a multiple of 16
_PACK_COLS = 20             # max fan_in


def _cdiv(a, b):
    return -(-a // b)


def _round_up(x, m):
    return _cdiv(x, m) * m


def _num_tensorcores():
    """Best-effort: v7x has 2 TensorCores/chip; v5e/v6e have 1."""
    try:
        kind = jax.devices()[0].device_kind.lower()
    except Exception:
        return 1
    return 2 if ("v7" in kind or "7x" in kind) else 1


def mlp_kernel(x_ref, w_ref, b_ref, o_ref):
    """Fused MLP on one (features, TB) batch tile.

    x_ref: (4, TB) bf16          w_ref: (_PACK_ROWS, _PACK_COLS) bf16 (resident)
    b_ref: (_PACK_ROWS, 1) f32   o_ref: (1, TB) f32
    bf16 MXU operands, f32 accumulation; bias add + ReLU in f32.
    """
    h = x_ref[...]                                               # (4, TB) bf16
    n_layers = len(_LAYER_DIMS)
    for li, (fan_in, fan_out) in enumerate(_LAYER_DIMS):
        r0 = _ROW_OFF[li]
        w = w_ref[r0:r0 + fan_out, 0:fan_in]                     # (fan_out, fan_in) bf16
        b = b_ref[r0:r0 + fan_out, :]                            # (fan_out, 1)      f32
        h = jnp.dot(w, h, preferred_element_type=jnp.float32) + b
        if li < n_layers - 1:
            h = jnp.maximum(h, 0.0).astype(jnp.bfloat16)         # next layer's operand
    o_ref[...] = h.astype(o_ref.dtype)                           # (1, TB) f32


def _pack_params(params):
    """Pack the 5 (W, b) pairs into one bf16 weight block + one f32 bias block."""
    w_pack = jnp.zeros((_PACK_ROWS, _PACK_COLS), jnp.bfloat16)
    b_pack = jnp.zeros((_PACK_ROWS, 1), jnp.float32)
    for (w, b), r0 in zip(params, _ROW_OFF):
        fo, fi = w.shape
        w_pack = w_pack.at[r0:r0 + fo, 0:fi].set(w.astype(jnp.bfloat16))
        b_pack = b_pack.at[r0:r0 + fo, 0:1].set(b.astype(jnp.float32).reshape(fo, 1))
    return w_pack, b_pack


def mlp_forward(x, params, *, block_b=16384):
    """x: (B, 4) f32. params: list of (W(out,in), b(out,1)) in PyTorch layout.

    Returns (B, 1) f32, matching nn.Sequential(Linear,ReLU,...,Linear)(x)
    (bf16 matmul operands, f32 accumulation -> ~1e-2 relative vs pure-f32).
    """
    B, in_dim = x.shape
    assert in_dim == _LAYER_DIMS[0][0]

    # ---- batch-tile selection: minimize padding, keep tiles lane-dense -------
    n_tiles = max(_cdiv(B, block_b), 1)
    # v7x: need >=2 tiles so the "parallel" grid axis can shard across both TCs.
    if _num_tensorcores() >= 2 and B >= 256:
        n_tiles = max(n_tiles, 2)
    TB = _round_up(_cdiv(B, n_tiles), 128)
    Bp = n_tiles * TB

    # Single fused pad + transpose + bf16-cast pass over x -> (4, Bp), batch on lanes.
    xt = jnp.pad(x, ((0, Bp - B), (0, 0))).T.astype(jnp.bfloat16)

    w_pack, b_pack = _pack_params(params)

    flops_per_row = 2 * sum(fi * fo for fi, fo in _LAYER_DIMS)
    cost = pl.CostEstimate(
        flops=flops_per_row * Bp,
        transcendentals=0,
        bytes_accessed=Bp * (in_dim * 2 + 4) + w_pack.size * 2 + b_pack.size * 4,
    )

    out_t = pl.pallas_call(
        mlp_kernel,
        out_shape=jax.ShapeDtypeStruct((1, Bp), jnp.float32),
        grid=(n_tiles,),
        in_specs=[
            # Batch tile: lane-dense, gridded (auto double-buffered).
            pl.BlockSpec((in_dim, TB), lambda i: (0, i)),
            # Packed weights / biases: constant block index -> VMEM-resident, one DMA.
            pl.BlockSpec((_PACK_ROWS, _PACK_COLS), lambda i: (0, 0)),
            pl.BlockSpec((_PACK_ROWS, 1), lambda i: (0, 0)),
        ],
        out_specs=pl.BlockSpec((1, TB), lambda i: (0, i)),
        compiler_params=pltpu.CompilerParams(
            dimension_semantics=("parallel",),        # shard batch tiles across TCs (v7x)
            vmem_limit_bytes=32 * 1024 * 1024,        # lift v5e's 16 MiB scoped default
        ),
        cost_estimate=cost,
    )(xt, w_pack, b_pack)

    # Drop batch padding, restore the (B, 1) output contract.
    return out_t[:, :B].T


def init_params(key):
    """PyTorch nn.Linear-style init, stored as W:(out,in), b:(out,1)."""
    params = []
    for (fan_in, fan_out) in _LAYER_DIMS:
        key, kw, kb = jax.random.split(key, 3)
        bound = 1.0 / jnp.sqrt(fan_in)
        w = jax.random.uniform(kw, (fan_out, fan_in), jnp.float32, -bound, bound)
        b = jax.random.uniform(kb, (fan_out, 1), jnp.float32, -bound, bound)
        params.append((w, b))
    return params


def reference_forward(x, params):
    h = x
    for i, (w, b) in enumerate(params):
        h = h @ w.T + b.T
        if i < len(params) - 1:
            h = jnp.maximum(h, 0.0)
    return h


if __name__ == "__main__":
    key = jax.random.PRNGKey(0)
    key, kx1, kx2 = jax.random.split(key, 3)
    params = init_params(key)

    # Small primary check (matches the module's expected tiny input).
    B = 8
    x = jax.random.normal(kx1, (B, 4), jnp.float32)
    out = jax.block_until_ready(mlp_forward(x, params))
    ref = reference_forward(x, params)
    assert out.shape == (B, 1), out.shape
    # bf16 matmul operands with f32 accumulation -> loosen tolerance vs pure f32.
    assert jnp.allclose(out, ref, atol=5e-2, rtol=5e-2), (out, ref)

    # Second check exercising batch padding (and the >=2-tile path on v7x).
    B2 = 300
    x2 = jax.random.normal(kx2, (B2, 4), jnp.float32)
    out2 = jax.block_until_ready(mlp_forward(x2, params))
    ref2 = reference_forward(x2, params)
    assert out2.shape == (B2, 1), out2.shape
    assert jnp.allclose(out2, ref2, atol=5e-2, rtol=5e-2)

    print("KERNEL_OK")
</pallas_src>

<mosaic_0001>
module attributes {stable_mosaic.version = 11 : i64} {
  func.func @mlp_kernel(%arg0: i32, %arg1: memref<4x128xbf16, #tpu.memory_space<vmem>>, %arg2: memref<112x20xbf16, #tpu.memory_space<vmem>>, %arg3: memref<112x1xf32, #tpu.memory_space<vmem>>, %arg4: memref<1x128xf32, #tpu.memory_space<vmem>>) attributes {dimension_semantics = [#tpu.dimension_semantics<parallel>], iteration_bounds = array<i64: 1>, scalar_prefetch = 0 : i64, scratch_operands = 0 : i64, tpu.core_type = #tpu.core_type<tc>, window_params = [{transform_indices = @transform_0, window_bounds = array<i64: 4, 128>}, {pipeline_mode = #tpu.pipeline_mode<synchronous>, transform_indices = @transform_1, window_bounds = array<i64: 112, 20>}, {pipeline_mode = #tpu.pipeline_mode<synchronous>, transform_indices = @transform_2, window_bounds = array<i64: 112, 1>}, {transform_indices = @transform_3, window_bounds = array<i64: 1, 128>}]} {
    %c0 = arith.constant 0 : index
    %c0_0 = arith.constant 0 : index
    %0 = vector.load %arg1[%c0, %c0_0] : memref<4x128xbf16, #tpu.memory_space<vmem>>, vector<4x128xbf16>
    %c0_1 = arith.constant 0 : index
    %c0_2 = arith.constant 0 : index
    %1 = vector.load %arg2[%c0_1, %c0_2] : memref<112x20xbf16, #tpu.memory_space<vmem>>, vector<10x4xbf16>
    %c0_3 = arith.constant 0 : index
    %c0_4 = arith.constant 0 : index
    %2 = vector.load %arg3[%c0_3, %c0_4] : memref<112x1xf32, #tpu.memory_space<vmem>>, vector<10x1xf32>
    %cst = arith.constant dense<0.000000e+00> : vector<10x128xf32>
    %3 = tpu.matmul %1, %0, %cst {dimension_numbers = #tpu.dot_dimension_numbers<[1], [0], [0], [1], [0, 0, 1, 1], [], []>} : vector<10x4xbf16>, vector<4x128xbf16>, vector<10x128xf32> -> vector<10x128xf32>
    %4 = vector.broadcast %2 : vector<10x1xf32> to vector<10x128xf32>
    %5 = arith.addf %3, %4 : vector<10x128xf32>
    %cst_5 = arith.constant 0.000000e+00 : f32
    %6 = vector.broadcast %cst_5 : f32 to vector<10x128xf32>
    %7 = arith.maximumf %5, %6 : vector<10x128xf32>
    %8 = arith.truncf %7 : vector<10x128xf32> to vector<10x128xbf16>
    %c16 = arith.constant 16 : index
    %c0_6 = arith.constant 0 : index
    %9 = vector.load %arg2[%c16, %c0_6] : memref<112x20xbf16, #tpu.memory_space<vmem>>, vector<20x10xbf16>
    %c16_7 = arith.constant 16 : index
    %c0_8 = arith.constant 0 : index
    %10 = vector.load %arg3[%c16_7, %c0_8] : memref<112x1xf32, #tpu.memory_space<vmem>>, vector<20x1xf32>
    %cst_9 = arith.constant dense<0.000000e+00> : vector<20x128xf32>
    %11 = tpu.matmul %9, %8, %cst_9 {dimension_numbers = #tpu.dot_dimension_numbers<[1], [0], [0], [1], [0, 0, 1, 1], [], []>} : vector<20x10xbf16>, vector<10x128xbf16>, vector<20x128xf32> -> vector<20x128xf32>
    %12 = vector.broadcast %10 : vector<20x1xf32> to vector<20x128xf32>
    %13 = arith.addf %11, %12 : vector<20x128xf32>
    %cst_10 = arith.constant 0.000000e+00 : f32
    %14 = vector.broadcast %cst_10 : f32 to vector<20x128xf32>
    %15 = arith.maximumf %13, %14 : vector<20x128xf32>
    %16 = arith.truncf %15 : vector<20x128xf32> to vector<20x128xbf16>
    %c48 = arith.constant 48 : index
    %c0_11 = arith.constant 0 : index
    %17 = vector.load %arg2[%c48, %c0_11] : memref<112x20xbf16, #tpu.memory_space<vmem>>, vector<20x20xbf16>
    %c48_12 = arith.constant 48 : index
    %c0_13 = arith.constant 0 : index
    %18 = vector.load %arg3[%c48_12, %c0_13] : memref<112x1xf32, #tpu.memory_space<vmem>>, vector<20x1xf32>
    %cst_14 = arith.constant dense<0.000000e+00> : vector<20x128xf32>
    %19 = tpu.matmul %17, %16, %cst_14 {dimension_numbers = #tpu.dot_dimension_numbers<[1], [0], [0], [1], [0, 0, 1, 1], [], []>} : vector<20x20xbf16>, vector<20x128xbf16>, vector<20x128xf32> -> vector<20x128xf32>
    %20 = vector.broadcast %18 : vector<20x1xf32> to vector<20x128xf32>
    %21 = arith.addf %19, %20 : vector<20x128xf32>
    %cst_15 = arith.constant 0.000000e+00 : f32
    %22 = vector.broadcast %cst_15 : f32 to vector<20x128xf32>
    %23 = arith.maximumf %21, %22 : vector<20x128xf32>
    %24 = arith.truncf %23 : vector<20x128xf32> to vector<20x128xbf16>
    %c80 = arith.constant 80 : index
    %c0_16 = arith.constant 0 : index
    %25 = vector.load %arg2[%c80, %c0_16] : memref<112x20xbf16, #tpu.memory_space<vmem>>, vector<10x20xbf16>
    %c80_17 = arith.constant 80 : index
    %c0_18 = arith.constant 0 : index
    %26 = vector.load %arg3[%c80_17, %c0_18] : memref<112x1xf32, #tpu.memory_space<vmem>>, vector<10x1xf32>
    %cst_19 = arith.constant dense<0.000000e+00> : vector<10x128xf32>
    %27 = tpu.matmul %25, %24, %cst_19 {dimension_numbers = #tpu.dot_dimension_numbers<[1], [0], [0], [1], [0, 0, 1, 1], [], []>} : vector<10x20xbf16>, vector<20x128xbf16>, vector<10x128xf32> -> vector<10x128xf32>
    %28 = vector.broadcast %26 : vector<10x1xf32> to vector<10x128xf32>
    %29 = arith.addf %27, %28 : vector<10x128xf32>
    %cst_20 = arith.constant 0.000000e+00 : f32
    %30 = vector.broadcast %cst_20 : f32 to vector<10x128xf32>
    %31 = arith.maximumf %29, %30 : vector<10x128xf32>
    %32 = arith.truncf %31 : vector<10x128xf32> to vector<10x128xbf16>
    %c96 = arith.constant 96 : index
    %c0_21 = arith.constant 0 : index
    %33 = vector.load %arg2[%c96, %c0_21] : memref<112x20xbf16, #tpu.memory_space<vmem>>, vector<1x10xbf16>
    %c96_22 = arith.constant 96 : index
    %c0_23 = arith.constant 0 : index
    %34 = vector.load %arg3[%c96_22, %c0_23] : memref<112x1xf32, #tpu.memory_space<vmem>>, vector<1x1xf32>
    %cst_24 = arith.constant dense<0.000000e+00> : vector<1x128xf32>
    %35 = tpu.matmul %33, %32, %cst_24 {dimension_numbers = #tpu.dot_dimension_numbers<[1], [0], [0], [1], [0, 0, 1, 1], [], []>} : vector<1x10xbf16>, vector<10x128xbf16>, vector<1x128xf32> -> vector<1x128xf32>
    %36 = vector.broadcast %34 : vector<1x1xf32> to vector<1x128xf32>
    %37 = arith.addf %35, %36 : vector<1x128xf32>
    %c0_25 = arith.constant 0 : index
    %c0_26 = arith.constant 0 : index
    %38 = vector.load %arg4[%c0_25, %c0_26] : memref<1x128xf32, #tpu.memory_space<vmem>>, vector<1x128xf32>
    tpu.vector_store %arg4[%c0_25, %c0_26], %37 {strides = array<i32>} : memref<1x128xf32, #tpu.memory_space<vmem>>, vector<1x128xf32>,
    return
  }
  func.func @transform_0(%arg0: i32) -> (i32, i32) {
    %c0_i32 = arith.constant 0 : i32
    %c0_i32_0 = arith.constant 0 : i32
    return %c0_i32, %arg0 : i32, i32
  }
  func.func @transform_1(%arg0: i32) -> (i32, i32) {
    %c0_i32 = arith.constant 0 : i32
    %c0_i32_0 = arith.constant 0 : i32
    %c0_i32_1 = arith.constant 0 : i32
    return %c0_i32, %c0_i32_0 : i32, i32
  }
  func.func @transform_2(%arg0: i32) -> (i32, i32) {
    %c0_i32 = arith.constant 0 : i32
    %c0_i32_0 = arith.constant 0 : i32
    %c0_i32_1 = arith.constant 0 : i32
    return %c0_i32, %c0_i32_0 : i32, i32
  }
  func.func @transform_3(%arg0: i32) -> (i32, i32) {
    %c0_i32 = arith.constant 0 : i32
    %c0_i32_0 = arith.constant 0 : i32
    return %c0_i32, %arg0 : i32, i32
  }
}

</mosaic_0001>

<bundles_post_ra>
// kernel: tpu_custom_call.1
= control target key start
LH: loop header
LB: loop body
LE: loop exit
PB: predicated region body
PF: predicated region fallthrough
CT: control target
= control target key end

     0   :  { %vm40_vm0 = vcmask 1041408   ;;  %v509_v1 = vmov 0.0   ;;  %vm510_vm1 = vmmov 0   ;;  %vm36_vm2 = vcmask 31744   ;;  %s625_s0 = inlined_call_operand.vmem [shape: bf16[4,128], index: 0, kind: input, shape index: {}]   ;;  %s626_s1 = inlined_call_operand.vmem [shape: bf16[112,20], index: 1, kind: input, shape index: {}]   ;;  %s627_s2 = inlined_call_operand.vmem [shape: f32[112,1], index: 2, kind: input, shape index: {}]   ;;  %s628_s3 = inlined_call_operand.hbm [shape: f32[1,128], index: 3, kind: output, shape index: {}]  }
   0x1   :  { %v16_v0 = vld [vmem:[%s625_s0] sm:$0x3]  ;;  %437 = vmatprep.subr.bf16.mxu0 %v509_v1  ;;  %439 = vmatprep.mubr.msk.bf16.mxu0 %vm510_vm1, %v509_v1  ;;  %v511_v4 = vmov 0   ;;  %v20_v6 = vld [vmem:[%s627_s2 + $0x8] sm:$0x3] }
   0x2   :  { %v42_v2 = vsel %vm40_vm0, %v16_v0, 0  ;;  %v479_v3 = vld [vmem:[%s626_s1] sm:$0x1f]   ;;  %477 = vset.pattern.permute.xlu0 %v511_v4  ;;  %478 = vset.pattern.permute.xlu1 %v511_v4 }
   0x3   :  { %438 = vmatpush3.bf16.msra.mxu0 %v42_v2  ;;  %v19_v5 = vld [vmem:[%s627_s2] sm:$0xff] }
   0x4   :  { %23 = vperm.xlu0 %477, %v19_v5  }
   0x6   :  { %440 = vmatmul.mubr.msk.bf16.vlgmr.msra.gmra.mrb[0].mxu0 %vm36_vm2, %v479_v3 }
   0x8   :  { %28 = vperm.xlu0 %477, %v20_v6  }
   0x9   :  { %8 = vsyncpa [#allocation3], 0  ;;  %v93_v7 = vld [vmem:[%s627_s2 + $0x20] sm:$0xf]  ;;  %v185_v8 = vld [vmem:[%s627_s2 + $0x38] sm:$0xff]  ;;  %vm117_vm3 = vcmask 80896  }
   0xa   :  { %v275_v9 = vld [vmem:[%s627_s2 + $0x50] sm:$0xff]  ;;  %v343_v10 = vld [vmem:[%s627_s2 + $0x60] sm:$0x1]  ;;  %v480_v11 = vld [vmem:[%s626_s1 + $0x8] sm:$0xff]   ;;  %vm124_vm4 = vcmask 1044480   ;;  %vm210_vm5 = vcmask 162816  }
   0xb   :  { %445 = vmatprep.mubr.msk.bf16.mxu1 %vm117_vm3, %v480_v11  ;;  %v91_v12 = vld [vmem:[%s627_s2 + $0x10] sm:$0xff]  ;;  %v92_v13 = vld [vmem:[%s627_s2 + $0x18] sm:$0xff]  ;;  %v186_v15 = vld [vmem:[%s627_s2 + $0x40] sm:$0xf]  ;;  %s512_s20 = smov [#allocation2]  }
   0xc   :  { %106 = vperm.xlu0 %477, %v93_v7   ;;  %96 = vperm.xlu1 %478, %v91_v12   ;;  %v184_v14 = vld [vmem:[%s627_s2 + $0x30] sm:$0xff]  ;;  %v276_v16 = vld [vmem:[%s627_s2 + $0x58] sm:$0x3]  ;;  %v483_v47 = vld [vmem:[%s626_s1 + $0x20] ss:$0 sps:$4 sm:$0x33]  }
   0xd   :  { %v481_v29 = vld [vmem:[%s626_s1 + $0x10] ss:$0 sps:$4 sm:$0x33]   ;;  %v482_v30 = vld [vmem:[%s626_s1 + $0x18] sm:$0xff]   ;;  %v484_v0 = vld [vmem:[%s626_s1 + $0x28] sm:$0x1f]  }
   0xe   :  { %453 = vmatprep.mubr.msk.bf16.mxu0 %vm210_vm5, %v482_v30  ;;  %s402_s21 = sshll.u32 %s512_s20, 4  ;;  %s403_s21 = int_to_ptr.vmem [resolvable:$true] %s402_s21 }
   0xf   :  { %s485_s22 = scalar_lea.vmem %s403_s21, 16  ;;  %s489_s23 = scalar_lea.vmem %s403_s21, 32 }
  0x10   :  { %194 = vperm.xlu0 %477, %v185_v8   ;;  %101 = vperm.xlu1 %478, %v92_v13   ;;  %v342_v13 = vld [vmem:[%s626_s1 + $0x30] sm:$0x1]  ;;  %p486_p0 = scmp.ne.s32.totalorder %s403_s21, %s485_s22  ;;  %p490_p1 = scmp.lt.s32.totalorder %s403_s21, %s403_s21 }
  0x11   :  { %p491_p2 = scmp.lt.s32.totalorder %s489_s23, %s485_s22 }
  0x13   :  { %p492_p3 = por %p491_p2, %p490_p1 }
  0x14   :  { %279 = vperm.xlu0 %477, %v275_v9   ;;  %189 = vperm.xlu1 %478, %v184_v14  }
  0x15   :  { %p493_p4 = pnand %p492_p3, %p486_p0 }
  0x18   :  { %346 = vperm.xlu0 %477, %v343_v10   ;;  %199 = vperm.xlu1 %478, %v186_v15  }
  0x1c   :  { %284 = vperm.xlu1 %478, %v276_v16  }
  0x83   :  { %v24_v17 = vpop.permute.xlu0 %23 }
  0x87   :  { %v29_v21 = vpop.permute.xlu0 %28 }
  0x8b   :  { %v97_v31 = vpop.permute.xlu1 %96  ;;  %v107_v33 = vpop.permute.xlu0 %106 }
  0x8f   :  { %v102_v38 = vpop.permute.xlu1 %101  ;;  %v195_v55 = vpop.permute.xlu0 %194 }
  0x93   :  { %v190_v48 = vpop.permute.xlu1 %189  ;;  %v280_v2 = vpop.permute.xlu0 %279 }
  0x97   :  { %v200_v49 = vpop.permute.xlu1 %199  ;;  %v347_v14 = vpop.permute.xlu0 %346 }
  0x9b   :  { %v285_v6 = vpop.permute.xlu1 %284 }
  0xd9   :  { %v78_v18 = vpop.f32.mrb[0].mxu0 }
  0xda   :  { %v79_v19 = vadd.f32 %v78_v18, %v24_v17  ;;  %v441_v20 = vpop.f32.mrb[1].mxu0 }
  0xdb   :  { %v81_v22 = vpop.f32.mrb[2].mxu0 }
  0xdc   :  { %v82_v23 = vadd.f32 %v81_v22, %v29_v21  ;;  %v442_v24 = vpop.f32.mrb[3].mxu0  ;;  %v85_v25 = vmax.f32 %v79_v19, 0.0 }
  0xde   :  { %v86_v26 = vmax.f32 %v82_v23, 0.0 }
  0xe0   :  { %v87_v27 = vpack.c.bf16 %v86_v26, %v85_v25 }
  0xe2   :  { %471 = vmatprep.subr.msk.bf16.mxu1 %vm124_vm4, %v87_v27  ;;  %v126_v28 = vsel %vm124_vm4, %v87_v27, 0 }
  0xe3   :  { %444 = vmatpush3.bf16.msra.mxu1 %v126_v28 }
  0xe4   :  { %457 = vmatprep.subr.bf16.mxu1 %v509_v1 }
  0xe6   :  { %446 = vmatmul.mubr.msk.bf16.vlgmr.msra.gmra.mrb[0].mxu1 %vm117_vm3, %v481_v29 }
  0xe7   :  { %461 = vmatprep.mubr.msk.bf16.mxu1 %vm510_vm1, %v509_v1 }
 0x1b9   :  { %v447_v32 = vpop.f32.mrb[0].mxu1 }
 0x1ba   :  { %v162_v34 = vpop.f32.mrb[1].mxu1  ;;  %v171_v35 = vadd.f32 %v447_v32, %v107_v33 }
 0x1bb   :  { %v163_v36 = vadd.f32 %v162_v34, %v97_v31  ;;  %v448_v37 = vpop.f32.mrb[2].mxu1 }
 0x1bc   :  { %v165_v39 = vpop.f32.mrb[3].mxu1  ;;  %v178_v41 = vmax.f32 %v171_v35, 0.0 }
 0x1bd   :  { %v166_v40 = vadd.f32 %v165_v39, %v102_v38  ;;  %v176_v42 = vmax.f32 %v163_v36, 0.0 }
 0x1be   :  { %v180_v45 = vpack.c.bf16 %v178_v41, %v178_v41 }
 0x1bf   :  { %v177_v43 = vmax.f32 %v166_v40, 0.0 }
 0x1c0   :  { %v218_v46 = vsel %vm40_vm0, %v180_v45, 0 }
 0x1c1   :  { %v179_v44 = vpack.c.bf16 %v177_v43, %v176_v42 }
 0x1c3   :  { %449 = vmatprep.subr.bf16.mxu0 %v179_v44 }
 0x1c4   :  { %450 = vmatpush3.bf16.msra.mxu0 %v179_v44 }
 0x1c5   :  { %472 = vmatprep.subr.msk.bf16.mxu0 %vm40_vm0, %v180_v45 }
 0x1c8   :  { %452 = vmatpush3.bf16.msra.mxu0 %v218_v46 }
 0x1c9   :  { %465 = vmatprep.subr.bf16.mxu0 %v509_v1 }
 0x1cb   :  { %454 = vmatmul.mubr.msk.bf16.vlgmr.msra.gmra.mrb[4].mxu0 %vm210_vm5, %v483_v47 }
 0x1cc   :  { %467 = vmatprep.mubr.msk.bf16.mxu0 %vm510_vm1, %v509_v1 }
 0x29e   :  { %v455_v50 = vpop.f32.mrb[4].mxu0 }
 0x29f   :  { %v263_v51 = vadd.f32 %v455_v50, %v200_v49  ;;  %v254_v52 = vpop.f32.mrb[5].mxu0 }
 0x2a0   :  { %v255_v53 = vadd.f32 %v254_v52, %v190_v48  ;;  %v456_v54 = vpop.f32.mrb[6].mxu0 }
 0x2a1   :  { %v257_v56 = vpop.f32.mrb[7].mxu0  ;;  %v270_v58 = vmax.f32 %v263_v51, 0.0 }
 0x2a2   :  { %v258_v57 = vadd.f32 %v257_v56, %v195_v55  ;;  %v268_v59 = vmax.f32 %v255_v53, 0.0 }
 0x2a3   :  { %v272_v62 = vpack.c.bf16 %v270_v58, %v270_v58 }
 0x2a4   :  { %v269_v60 = vmax.f32 %v258_v57, 0.0 }
 0x2a5   :  { %v296_v63 = vsel %vm40_vm0, %v272_v62, 0 }
 0x2a6   :  { %v271_v61 = vpack.c.bf16 %v269_v60, %v268_v59 }
 0x2a8   :  { %458 = vmatpush3.bf16.msra.mxu1 %v271_v61 }
 0x2a9   :  { %459 = vmatprep.subr.bf16.mxu1 %v509_v1 }
 0x2ac   :  { %460 = vmatpush3.bf16.msra.mxu1 %v296_v63 }
 0x2af   :  { %462 = vmatmul.mubr.msk.bf16.vlgmr.msra.gmra.mrb[4].mxu1 %vm210_vm5, %v484_v0 }
 0x382   :  { %v332_v3 = vpop.f32.mrb[4].mxu1 }
 0x383   :  { %v333_v4 = vadd.f32 %v332_v3, %v280_v2  ;;  %v463_v5 = vpop.f32.mrb[5].mxu1 }
 0x384   :  { %v335_v7 = vpop.f32.mrb[6].mxu1 }
 0x385   :  { %v336_v8 = vadd.f32 %v335_v7, %v285_v6  ;;  %v464_v9 = vpop.f32.mrb[7].mxu1  ;;  %v339_v10 = vmax.f32 %v333_v4, 0.0 }
 0x387   :  { %v340_v11 = vmax.f32 %v336_v8, 0.0 }
 0x389   :  { %v341_v1 = vpack.c.bf16 %v340_v11, %v339_v10 }
 0x38b   :  { %v353_v12 = vsel %vm124_vm4, %v341_v1, 0 }
 0x38c   :  { %466 = vmatpush3.bf16.msra.mxu0 %v353_v12 }
 0x38f   :  { %468 = vmatmul.mubr.msk.bf16.vlgmr.msra.gmra.mrb[8].mxu0 %vm117_vm3, %v342_v13 }
 0x462   :  { %v389_v15 = vpop.f32.mrb[8].mxu0 }
 0x463   :  { %v390_v16 = vadd.f32 %v389_v15, %v347_v14  ;;  %v469_v17 = vpop.f32.mrb[9].mxu0 }
 0x464   :  { %v392_v18 = vpop.f32.mrb[10].mxu0 }
 0x465   :  { %395 = vst [vmem:[#allocation2] sm:$0x1] %v390_v16  ;;  %v470_v19 = vpop.f32.mrb[11].mxu0 }
 0x466   :  { %496 = shalt.err (!%p493_p4)
}
 0x467   :  { %s497_s25 = scalar_lea.hbm %s628_s3, 16 }
 0x468   :  { %p498_p5 = scmp.ne.s32.totalorder %s628_s3, %s497_s25  ;;  %p501_p6 = scmp.lt.u32.totalorder %s497_s25, %s628_s3 }
 0x46a   :  { %p503_p7 = pnand %p501_p6, %p498_p5 }
 0x46c   :  { %506 = shalt.err (!%p503_p7)
}
 0x46d   :  { %405 = dma.vmem_to_hbm [thread:$0]  %s403_s21, 16, %s628_s3, [#allocation3]  }
 0x46e   :  { %507 = dma.done.wait [#allocation3], 16  }
 0x46f   :  { %508 = vsyncadd [#allocation3], 4294967280 }
 0x470   :  { %409 = vsyncpa [#allocation3], 1 }

</bundles_post_ra>
